<compile_context>
chip_gen: v7x
topology: tpu7x:2x2x1
jax: 0.10.0
libtpu: 0.0.40
codegen_flags: <defaults>
</compile_context>

<pallas_src>
import jax
import jax.numpy as jnp
from jax.experimental import pallas as pl
from jax.experimental.pallas import tpu as pltpu


def _round_up(v, m):
    return (v + m - 1) // m * m


def _split_matmul(a, b):
    """~f32-accurate (TB, W) @ (W, W) matmul, independent of MXU f32 handling.

    Splits both f32 operands into bf16 hi/lo parts (classic bf16x3, dropping
    the negligible lo*lo term).  The MXU is otherwise idle in this kernel, so
    the extra passes are free under the HBM-bandwidth bound.
    """
    a_hi = a.astype(jnp.bfloat16).astype(jnp.float32)
    a_lo = a - a_hi
    b_hi = b.astype(jnp.bfloat16).astype(jnp.float32)
    b_lo = b - b_hi

    def dot(u, v):
        return jnp.dot(u, v, preferred_element_type=jnp.float32)

    return dot(a_hi, b_hi) + dot(a_lo, b_hi) + dot(a_hi, b_lo)


def _spatial_attention_kernel(x_ref, band_ref, b_ref, o_ref):
    # x_ref    : (TB, F, W) VMEM, input dtype
    # band_ref : (2, W, W)  VMEM, f32 banded conv matrices (max row, avg*1/F row)
    # b_ref    : (1,)       SMEM, f32 conv bias
    # o_ref    : (TB, F, W) VMEM, input dtype
    x = x_ref[...]

    # Reductions over the feature (sublane) axis; accumulate in f32
    # (max is exact in any dtype, sum gets an f32 accumulator).
    feat_max = jnp.max(x, axis=1).astype(jnp.float32)        # (TB, W)
    feat_sum = jnp.sum(x, axis=1, dtype=jnp.float32)         # (TB, W); 1/F folded into band

    # Conv1d(2 -> 1, K, stride 1, zero padding K//2) as two banded matmuls:
    # the band matrices encode the taps *and* the zero boundary exactly.
    refine = (_split_matmul(feat_max, band_ref[0])
              + _split_matmul(feat_sum, band_ref[1])
              + b_ref[0])                                     # (TB, W) f32

    # Broadcast the per-(batch, position) weight over all features in the
    # input dtype (keeps bf16 blocks bf16 for the dominant elementwise pass).
    o_ref[...] = (refine.astype(x.dtype)[:, None, :] * x).astype(o_ref.dtype)


def spatial_attention(x, conv_w, conv_b, *, kernel_size,
                      target_block_bytes=4 << 20,    # in+out HBM bytes per grid step
                      vmem_block_budget=24 << 20):   # double-buffered in+out block budget
    """x: (B, F, W); conv_w: (1, 2, K); conv_b: (1,)."""
    if kernel_size % 2 != 1:
        # Even k with padding=k//2 changes the output length in PyTorch Conv1d,
        # which would also break the broadcast multiply in the original module.
        raise ValueError("SpatialAttention requires an odd kernel_size.")
    B, F, W = x.shape
    K = kernel_size
    pad = K // 2

    # --- Conv params -> banded matrices (built once, outside the kernel). ---
    # M[c, q, p] = w[c, q - p + pad] when |q - p| <= pad else 0, so that
    # (feat @ M)[p] = sum_j w[c, j] * feat[p + j - pad] with exact zero padding.
    w2 = conv_w.reshape(2, K).astype(jnp.float32)
    w2 = w2 * jnp.array([[1.0], [1.0 / F]], jnp.float32)      # fold 1/F into avg taps
    q_idx = jnp.arange(W, dtype=jnp.int32)[:, None]           # input position  (row)
    p_idx = jnp.arange(W, dtype=jnp.int32)[None, :]           # output position (col)
    tap = q_idx - p_idx + pad
    valid = (tap >= 0) & (tap < K)
    band = jnp.where(valid[None, :, :], w2[:, jnp.clip(tap, 0, K - 1)], 0.0)  # (2, W, W)
    bias = conv_b.reshape(1).astype(jnp.float32)

    # --- Batch-block sizing (account for sublane/lane VMEM padding). ---
    itemsize = x.dtype.itemsize
    sublane_pack = 8 * max(1, 4 // itemsize)                  # 8 f32, 16 bf16, 32 int8
    row_vmem = _round_up(F, sublane_pack) * _round_up(W, 128) * itemsize
    row_hbm = F * W * itemsize
    tb_traffic = max(1, target_block_bytes // max(1, 2 * row_hbm))
    tb_vmem = max(1, vmem_block_budget // max(1, 4 * row_vmem))
    tb = max(1, min(B, tb_traffic, tb_vmem))
    steps = pl.cdiv(B, tb)
    # v7x megacore: prefer an even number of grid steps so both TCs stay busy.
    if steps % 2 == 1 and steps < B:
        alt_tb = pl.cdiv(B, steps + 1)
        if pl.cdiv(B, alt_tb) % 2 == 0:
            tb = alt_tb
            steps = pl.cdiv(B, tb)

    # Raise the scoped VMEM limit (v5e defaults to 16 MiB) with headroom for
    # the double-buffered in/out blocks and the band matrices.
    band_bytes = 2 * W * W * 4
    needed_vmem = 4 * tb * row_vmem + 2 * band_bytes + (4 << 20)
    vmem_limit_bytes = int(min(max(needed_vmem, 48 << 20), 112 << 20))

    return pl.pallas_call(
        _spatial_attention_kernel,
        out_shape=jax.ShapeDtypeStruct((B, F, W), x.dtype),
        grid_spec=pltpu.PrefetchScalarGridSpec(
            num_scalar_prefetch=0,
            grid=(steps,),
            in_specs=[
                pl.BlockSpec((tb, F, W), lambda i: (i, 0, 0)),
                pl.BlockSpec((2, W, W), lambda i: (0, 0, 0)),
                pl.BlockSpec(memory_space=pltpu.MemorySpace.SMEM),
            ],
            out_specs=pl.BlockSpec((tb, F, W), lambda i: (i, 0, 0)),
        ),
        compiler_params=pltpu.CompilerParams(
            dimension_semantics=("parallel",),
            vmem_limit_bytes=vmem_limit_bytes),
    )(x, band, bias)


def _reference(x, conv_w, conv_b, kernel_size):
    """Plain-JAX reference mirroring the PyTorch forward (exact f32 taps)."""
    B, F, W = x.shape
    pad = kernel_size // 2
    feat = jnp.stack([jnp.max(x, axis=1), jnp.sum(x, axis=1) / F], axis=1)  # (B, 2, W)
    feat_p = jnp.pad(feat, ((0, 0), (0, 0), (pad, pad)))
    refine = conv_b.reshape(1, 1) + sum(
        conv_w[0, c, j] * feat_p[:, c, j:j + W]
        for c in range(2) for j in range(kernel_size))                      # (B, W)
    return refine[:, None, :] * x


if __name__ == "__main__":
    key = jax.random.PRNGKey(0)
    kx, kw, kb = jax.random.split(key, 3)

    batch, feature_num, window_size = 2, 4, 16
    kernel_size = 3

    x = jax.random.normal(kx, (batch, feature_num, window_size), jnp.float32)
    conv_w = jax.random.normal(kw, (1, 2, kernel_size), jnp.float32) * 0.1
    conv_b = jax.random.normal(kb, (1,), jnp.float32) * 0.1

    out = spatial_attention(x, conv_w, conv_b, kernel_size=kernel_size)
    out = jax.block_until_ready(out)

    ref = _reference(x, conv_w, conv_b, kernel_size)
    assert out.shape == (batch, feature_num, window_size)
    # Tolerance covers the worst-case bf16x3 MXU path for the tiny conv matmul.
    assert jnp.allclose(out, ref, atol=5e-4, rtol=5e-4), "mismatch vs reference"

    print("KERNEL_OK")
</pallas_src>

<mosaic_0001>
module attributes {stable_mosaic.version = 11 : i64} {
  func.func @_spatial_attention_kernel(%arg0: i32, %arg1: memref<1x4x16xf32, #tpu.memory_space<vmem>>, %arg2: memref<2x16x16xf32, #tpu.memory_space<vmem>>, %arg3: memref<1xf32, #tpu.memory_space<smem>>, %arg4: memref<1x4x16xf32, #tpu.memory_space<vmem>>) attributes {dimension_semantics = [#tpu.dimension_semantics<parallel>], iteration_bounds = array<i64: 2>, scalar_prefetch = 0 : i64, scratch_operands = 0 : i64, tpu.core_type = #tpu.core_type<tc>, window_params = [{transform_indices = @transform_0, window_bounds = array<i64: 1, 4, 16>}, {pipeline_mode = #tpu.pipeline_mode<synchronous>, transform_indices = @transform_1, window_bounds = array<i64: 2, 16, 16>}, {transform_indices = @transform_2, window_bounds = array<i64: 1>}, {transform_indices = @transform_3, window_bounds = array<i64: 1, 4, 16>}]} {
    %c0 = arith.constant 0 : index
    %c0_0 = arith.constant 0 : index
    %c0_1 = arith.constant 0 : index
    %0 = vector.load %arg1[%c0, %c0_0, %c0_1] : memref<1x4x16xf32, #tpu.memory_space<vmem>>, vector<1x4x16xf32>
    %cst = arith.constant dense<0xFF800000> : vector<1x16xf32>
    %1 = vector.multi_reduction <maximumf>, %0, %cst [1] : vector<1x4x16xf32> to vector<1x16xf32>
    %cst_2 = arith.constant dense<0.000000e+00> : vector<1x16xf32>
    %2 = vector.multi_reduction <add>, %0, %cst_2 [1] : vector<1x4x16xf32> to vector<1x16xf32>
    %c0_3 = arith.constant 0 : index
    %c0_4 = arith.constant 0 : index
    %c0_5 = arith.constant 0 : index
    %3 = vector.load %arg2[%c0_3, %c0_4, %c0_5] : memref<2x16x16xf32, #tpu.memory_space<vmem>>, vector<1x16x16xf32>
    %4 = vector.shape_cast %3 : vector<1x16x16xf32> to vector<16x16xf32>
    %5 = arith.truncf %1 : vector<1x16xf32> to vector<1x16xbf16>
    %6 = arith.extf %5 : vector<1x16xbf16> to vector<1x16xf32>
    %7 = arith.subf %1, %6 : vector<1x16xf32>
    %8 = arith.truncf %4 : vector<16x16xf32> to vector<16x16xbf16>
    %9 = arith.extf %8 : vector<16x16xbf16> to vector<16x16xf32>
    %10 = arith.subf %4, %9 : vector<16x16xf32>
    %cst_6 = arith.constant dense<0.000000e+00> : vector<1x16xf32>
    %11 = tpu.matmul %6, %9, %cst_6 {dimension_numbers = #tpu.dot_dimension_numbers<[1], [0], [0], [1], [0, 0, 1, 1], [], []>} : vector<1x16xf32>, vector<16x16xf32>, vector<1x16xf32> -> vector<1x16xf32>
    %cst_7 = arith.constant dense<0.000000e+00> : vector<1x16xf32>
    %12 = tpu.matmul %7, %9, %cst_7 {dimension_numbers = #tpu.dot_dimension_numbers<[1], [0], [0], [1], [0, 0, 1, 1], [], []>} : vector<1x16xf32>, vector<16x16xf32>, vector<1x16xf32> -> vector<1x16xf32>
    %13 = arith.addf %11, %12 : vector<1x16xf32>
    %cst_8 = arith.constant dense<0.000000e+00> : vector<1x16xf32>
    %14 = tpu.matmul %6, %10, %cst_8 {dimension_numbers = #tpu.dot_dimension_numbers<[1], [0], [0], [1], [0, 0, 1, 1], [], []>} : vector<1x16xf32>, vector<16x16xf32>, vector<1x16xf32> -> vector<1x16xf32>
    %15 = arith.addf %13, %14 : vector<1x16xf32>
    %c1 = arith.constant 1 : index
    %c0_9 = arith.constant 0 : index
    %c0_10 = arith.constant 0 : index
    %16 = vector.load %arg2[%c1, %c0_9, %c0_10] : memref<2x16x16xf32, #tpu.memory_space<vmem>>, vector<1x16x16xf32>
    %17 = vector.shape_cast %16 : vector<1x16x16xf32> to vector<16x16xf32>
    %18 = arith.truncf %2 : vector<1x16xf32> to vector<1x16xbf16>
    %19 = arith.extf %18 : vector<1x16xbf16> to vector<1x16xf32>
    %20 = arith.subf %2, %19 : vector<1x16xf32>
    %21 = arith.truncf %17 : vector<16x16xf32> to vector<16x16xbf16>
    %22 = arith.extf %21 : vector<16x16xbf16> to vector<16x16xf32>
    %23 = arith.subf %17, %22 : vector<16x16xf32>
    %cst_11 = arith.constant dense<0.000000e+00> : vector<1x16xf32>
    %24 = tpu.matmul %19, %22, %cst_11 {dimension_numbers = #tpu.dot_dimension_numbers<[1], [0], [0], [1], [0, 0, 1, 1], [], []>} : vector<1x16xf32>, vector<16x16xf32>, vector<1x16xf32> -> vector<1x16xf32>
    %cst_12 = arith.constant dense<0.000000e+00> : vector<1x16xf32>
    %25 = tpu.matmul %20, %22, %cst_12 {dimension_numbers = #tpu.dot_dimension_numbers<[1], [0], [0], [1], [0, 0, 1, 1], [], []>} : vector<1x16xf32>, vector<16x16xf32>, vector<1x16xf32> -> vector<1x16xf32>
    %26 = arith.addf %24, %25 : vector<1x16xf32>
    %cst_13 = arith.constant dense<0.000000e+00> : vector<1x16xf32>
    %27 = tpu.matmul %19, %23, %cst_13 {dimension_numbers = #tpu.dot_dimension_numbers<[1], [0], [0], [1], [0, 0, 1, 1], [], []>} : vector<1x16xf32>, vector<16x16xf32>, vector<1x16xf32> -> vector<1x16xf32>
    %28 = arith.addf %26, %27 : vector<1x16xf32>
    %29 = arith.addf %15, %28 : vector<1x16xf32>
    %c0_14 = arith.constant 0 : index
    %30 = memref.load %arg3[%c0_14] : memref<1xf32, #tpu.memory_space<smem>>
    %31 = vector.broadcast %30 : f32 to vector<1x16xf32>
    %32 = arith.addf %29, %31 : vector<1x16xf32>
    %33 = vector.shape_cast %32 : vector<1x16xf32> to vector<1x1x16xf32>
    %34 = vector.broadcast %33 : vector<1x1x16xf32> to vector<1x4x16xf32>
    %35 = arith.mulf %34, %0 : vector<1x4x16xf32>
    %c0_15 = arith.constant 0 : index
    %c0_16 = arith.constant 0 : index
    %c0_17 = arith.constant 0 : index
    %36 = vector.load %arg4[%c0_15, %c0_16, %c0_17] : memref<1x4x16xf32, #tpu.memory_space<vmem>>, vector<1x4x16xf32>
    tpu.vector_store %arg4[%c0_15, %c0_16, %c0_17], %35 {strides = array<i32>} : memref<1x4x16xf32, #tpu.memory_space<vmem>>, vector<1x4x16xf32>,
    return
  }
  func.func @transform_0(%arg0: i32) -> (i32, i32, i32) {
    %c0_i32 = arith.constant 0 : i32
    %c0_i32_0 = arith.constant 0 : i32
    %c0_i32_1 = arith.constant 0 : i32
    return %arg0, %c0_i32, %c0_i32_0 : i32, i32, i32
  }
  func.func @transform_1(%arg0: i32) -> (i32, i32, i32) {
    %c0_i32 = arith.constant 0 : i32
    %c0_i32_0 = arith.constant 0 : i32
    %c0_i32_1 = arith.constant 0 : i32
    %c0_i32_2 = arith.constant 0 : i32
    return %c0_i32, %c0_i32_0, %c0_i32_1 : i32, i32, i32
  }
  func.func @transform_2(%arg0: i32) -> i32 {
    %c0_i32 = arith.constant 0 : i32
    %c0_i32_0 = arith.constant 0 : i32
    return %c0_i32 : i32
  }
  func.func @transform_3(%arg0: i32) -> (i32, i32, i32) {
    %c0_i32 = arith.constant 0 : i32
    %c0_i32_0 = arith.constant 0 : i32
    %c0_i32_1 = arith.constant 0 : i32
    return %arg0, %c0_i32, %c0_i32_0 : i32, i32, i32
  }
}

</mosaic_0001>

<bundles_post_ra>
// kernel: tpu_custom_call.1
= control target key start
LH: loop header
LB: loop body
LE: loop exit
PB: predicated region body
PF: predicated region fallthrough
CT: control target
= control target key end

     0   :  { %s1319_s0 = inlined_call_operand.hbm [shape: f32[2,4,16], index: 0, kind: input, shape index: {}]   ;;  %s1320_s1 = inlined_call_operand.hbm [shape: f32[2,16,16], index: 1, kind: input, shape index: {}]   ;;  %s1321_s2 = inlined_call_operand.<no memory space> [shape: f32[1], index: 2, kind: input, shape index: {}]   ;;  %s1322_s3 = inlined_call_operand.hbm [shape: f32[2,4,16], index: 3, kind: output, shape index: {}]  }
   0x1   :  { %8 = sst [smem:[#allocation2]] %s1321_s2 }
   0x2   :  { %9 = vsyncpa [#allocation4], 0 }
   0x3   :  { %11 = vsyncpa [#allocation4 + $0x1], 0 }
   0x4   :  { %12 = vsyncpa [#allocation7], 0 }
   0x5   :  { %13 = vsyncpa [#allocation5], 0 }
   0x6   :  { %15 = vsyncpa [#allocation5 + $0x1], 0  ;;  %s1099_s14 = smov 0   ;;  %s1101_s15 = smov 0  }
   0x7   :  { %s1103_s16 = smov 0   ;;  %s1105_s17 = smov 0  }
   0x8 LB: > { %s1120_s2 = sadd.s32 4294967295, %s1066_s17   ;;  %s778_s18 = sadd.s32 4294967294, %s1066_s17   ;;  %s1066_s17 = sphi %s1105_s17, %s1342_s17   ;;  %s1062_s16 = sphi %s1103_s16, %s1341_s16   ;;  %s1058_s15 = sphi %s1101_s15, %s1340_s15   ;;  %s1054_s14 = sphi %s1099_s14, %s1339_s14  }
   0x9   : > { %p41_p0 = scmp.ne.s32.totalorder %s1058_s15, %s1054_s14  ;;  %p1323_p1 = scmp.eq.s32.totalorder %s1120_s2, 0 }
   0xa   : > { %p113_p3 = scmp.eq.s32.totalorder %s778_s18, 1  ;;  %p779_p5 = scmp.ge.s32.totalorder %s1066_s17, 1 }
   0xb   : > { %p1129_p4 = por %p1323_p1, %p41_p0  ;;  %p120_p7 = scmp.lt.s32.totalorder %s1066_s17, 3 }
   0xc   : > { %p1134_p6 = por %p113_p3, %p41_p0  ;;  %s1068_s22 = smov [#allocation6]  }
   0xd   : > { %s1326_s19 = scalar_select %p1129_p4, 1, 0 }
   0xe   : > { %s1327_s20 = scalar_select %p1134_p6, 1, 0 }
   0xf   : > { %p1139_p8 = pnand %p779_p5, %p120_p7  ;;  %s132_s23 = sshll.u32 %s1068_s22, 4  ;;  %s1143_s23 = int_to_ptr.vmem [resolvable:$true] %s132_s23 }
  0x10   : > { %s1155_s25 = sadd.s32 1, %s1066_s17   ;;  %s28_s26 = sadd.s32 1, %s1062_s16 }
  0x11   : > { %s1328_s21 = scalar_select %p1139_p8, 1, 0 }
  0x12   : > { %p884_p9 = pneg %p1139_p8  ;;  %s25_s27 = ssub.s32 %s1066_s17, %s1155_s25 }
  0x13   : > { %s938_s30 = scalar_lea.hbm %s1320_s1, 512 }
  0x14   : > { %p1150_p11 = pnand %p884_p9, %p1323_p1  ;;  %p939_p12 = scmp.ne.s32.totalorder %s1320_s1, %s938_s30 }
  0x15   : > { %p945_p5 = scmp.lt.u32.totalorder %s938_s30, %s1320_s1 }
  0x16   : > { %p940_p13 = pneg %p1150_p11 }
  0x18   : > { %p941_p0 = pnand %p940_p13, %p939_p12 }
  0x1a   : > { %p942_p3 = pneg %p941_p0 }
  0x1c   : > { %p947_p7 = pnand %p945_p5, %p942_p3 }
  0x1e   : > { %950 = shalt.err (!%p947_p7)
}
  0x1f   : > { %s951_s8 = scalar_lea.vmem %s1143_s23, 512  ;;  %p959_p2 = scmp.lt.s32.totalorder %s1143_s23, %s1143_s23 }
  0x20   : > { %p952_p9 = scmp.ne.s32.totalorder %s1143_s23, %s951_s8  ;;  %p960_p6 = scmp.lt.s32.totalorder %s951_s8, %s951_s8 }
  0x22   : > { %p954_p10 = pnand %p952_p9, %p940_p13  ;;  %p961_p4 = por %p960_p6, %p959_p2 }
  0x24   : > { %p955_p1 = pneg %p954_p10 }
  0x26   : > { %p962_p8 = pnand %p961_p4, %p955_p1 }
  0x28   : > { %965 = shalt.err (!%p962_p8)
}
  0x29   : > { %s1069_s9 = smov 128   ;;  %s1070_s10 = smov 8  }
  0x2a   : > { %887 = dma.hbm_to_vmem [thread:$0]  (!%p1150_p11), %s1320_s1, 512, %s1143_s23, [#allocation7], %s1069_s9, %s1069_s9, %s1070_s10  }
  0x2b   : > { %p26_p2 = scmp.eq.s32.totalorder %s25_s27, 0  ;;  %p35_p1 = scmp.ne.s32.totalorder %s1062_s16, %s1058_s15 }
  0x2c   : > { %p36_p4 = scmp.eq.s32.totalorder %s1066_s17, 0  ;;  %p897_p6 = scmp.lt.s32.totalorder %s1066_s17, 2 }
  0x2d   : > { %s1186_s13 = scalar_select %p26_p2, %s1062_s16, %s28_s26  }
  0x2e   : > { %p37_p8 = por %p36_p4, %p35_p1  ;;  %p1330_p10 = scmp.eq.s32.totalorder %s1120_s2, 1 }
  0x2f   : > { %s149_s22 = sand.u32 1, %s1062_s16   ;;  %s783_s28 = sshll.u32 %s1066_s17, 6 }
  0x30   : > { %p1190_p12 = por %p1330_p10, %p35_p1  ;;  %s782_s29 = sshll.u32 %s149_s22, 2 }
  0x31   : > { %s1199_s4 = scalar_lea.hbm %s1319_s0, %s783_s28  ;;  %s153_s23 = scalar_lea.vmem [#allocation3], %s782_s29 }
  0x32   : > { %s160_s26 = sshll.u32 %s153_s23, 4  ;;  %p1201_p11 = pnand %p897_p6, %p37_p8  ;;  %s1205_s26 = int_to_ptr.vmem [resolvable:$true] %s160_s26 }
  0x33   : > { %s150_s5 = scalar_lea.sflag [#allocation4], %s149_s22  ;;  %s966_s6 = scalar_lea.hbm %s1199_s4, 64 }
  0x34   : > { %p967_p13 = scmp.ne.s32.totalorder %s1199_s4, %s966_s6  ;;  %p968_p0 = pneg %p1201_p11 }
  0x35   : > { %s971_s9 = scalar_lea.hbm %s1319_s0, 128  ;;  %p972_p7 = scmp.lt.u32.totalorder %s1199_s4, %s1319_s0 }
  0x36   : > { %p969_p3 = pnand %p968_p0, %p967_p13  ;;  %p973_p9 = scmp.lt.u32.totalorder %s971_s9, %s966_s6 }
  0x37   : > { %p975_p1 = scmp.lt.u32.totalorder %s966_s6, %s1199_s4 }
  0x38   : > { %p970_p5 = pneg %p969_p3  ;;  %p974_p2 = por %p973_p9, %p972_p7 }
  0x3a   : > { %p976_p4 = por %p975_p1, %p974_p2 }
  0x3c   : > { %p977_p6 = pnand %p976_p4, %p970_p5 }
  0x3e   : > { %980 = shalt.err (!%p977_p6)
}
  0x3f   : > { %s981_s12 = scalar_lea.vmem %s1205_s26, 64  ;;  %s1071_s22 = smov [#allocation3]  }
  0x40   : > { %p982_p8 = scmp.ne.s32.totalorder %s1205_s26, %s981_s12  ;;  %s986_s28 = sshll.u32 %s1071_s22, 4  ;;  %s987_s28 = int_to_ptr.vmem [resolvable:$false] %s986_s28 }
  0x41   : > { %s988_s29 = scalar_lea.vmem %s987_s28, 128  ;;  %p989_p3 = scmp.lt.s32.totalorder %s1205_s26, %s987_s28 }
  0x42   : > { %p984_p10 = pnand %p982_p8, %p968_p0  ;;  %p990_p7 = scmp.lt.s32.totalorder %s988_s29, %s981_s12 }
  0x44   : > { %p985_p13 = pneg %p984_p10  ;;  %p991_p9 = por %p990_p7, %p989_p3 }
  0x46   : > { %p992_p2 = pnand %p991_p9, %p985_p13 }
  0x48   : > { %995 = shalt.err (!%p992_p2)
}
  0x49   : > { %891 = dma.hbm_to_vmem [thread:$0]  (!%p1201_p11), %s1199_s4, 64, %s1205_s26, %s150_s5  }
  0x4a   : > { %p1333_p5 = scmp.ne.s32.totalorder %s1328_s21, 0 }
  0x4b   : > { %s1235_s24 = sand.u32 (!%p1333_p5), 1, %s1058_s15   ;;  %p1334_p0 = scmp.ne.s32.totalorder (!%p1333_p5), %s1326_s19, 0 }
  0x4c   : > { %169 = sbr.rel (%p1333_p5) target bundleno = 354 (0x162), region = 32  ;;  %s785_s30 = sshll.u32 (!%p1333_p5), %s1235_s24, 2 }
  0x4d   : > { %s172_s23 = scalar_lea.sflag (!%p1333_p5), [#allocation4], %s1235_s24  ;;  %s175_s6 = scalar_lea.vmem (!%p1333_p5), [#allocation3], %s785_s30 }
  0x53   : > { %1041 = dma.done.wait (%p1334_p0), %s172_s23, 64  }
  0x54   : > { %1043 = vsyncadd (%p1334_p0), %s172_s23, 4294967232  ;;  %p1335_p11 = scmp.eq.s32.totalorder %s1120_s2, 0 }
  0x56   : > { %1045 = dma.done.wait (%p1335_p11), [#allocation7], 512   ;;  %p1336_p1 = pmov %p1335_p11 }
  0x57   : > { %v1072_v0 = vmov 0.0|0.0   ;;  %vm1073_vm0 = vmmov 0   ;;  %v1074_v1 = vmov 0.0   ;;  %vm203_vm1 = vcmask 125952   ;;  %v218_v2 = vld [vmem:[#allocation6] sm:$0xff]  ;;  %v219_v3 = vld [vmem:[#allocation6 + $0x8] sm:$0xff] }
  0x58   : > { %1047 = vsyncadd (%p1336_p1), [#allocation7], 4294966784  ;;  %858 = vmatprep.subr.bf16.mxu0 %v1072_v0  ;;  %861 = vmatprep.subr.bf16.mxu1 %v1072_v0  ;;  %v1251_v4 = vld [vmem:[%s175_s6] sm:$0xf]  ;;  %v223_v5 = vpack.c.bf16 %v219_v3, %v218_v2  ;;  %v447_v11 = vld [vmem:[#allocation6 + $0x10] sm:$0xff]  ;;  %vm228_vm2 = vcmask 130048   ;;  %v678_v49 = vlaneseq }
  0x59   : > { %820 = vmatprep.mubr.msk.f32.mxu0 %vm1073_vm0, %v1074_v1  ;;  %827 = vmatprep.mubr.msk.f32.mxu1 %vm1073_vm0, %v1074_v1  ;;  %v204_v6 = vsel %vm203_vm1, %v1251_v4, -inf  ;;  %v211_v7 = vsel %vm203_vm1, %v1251_v4, 0.0  ;;  %v448_v12 = vld [vmem:[#allocation6 + $0x18] sm:$0xff]  ;;  %s675_s19 = sld [smem:[#allocation2]]  ;;  %s795_s21 = sshll.u32 %s1120_s2, 6 }
  0x5a   : > { %v205_v8 = vrot.slane %v204_v6, 4  ;;  %v212_v9 = vrot.slane %v211_v7, 4  ;;  %860 = vmatpush3.bf16.msra.mxu0 %v223_v5  ;;  %863 = vmatpush3.bf16.msra.mxu1 %v223_v5  ;;  %v452_v16 = vpack.c.bf16 %v448_v12, %v447_v11  ;;  %v224_v19 = vunpack.c.l.bf16 %v223_v5  ;;  %s201_s4 = scalar_lea.vmem [#allocation8], %s785_s30  ;;  %s1274_s7 = scalar_lea.hbm %s1322_s3, %s795_s21 }
  0x5b   : > { %864 = vmatprep.subr.bf16.mxu0 %v1072_v0  ;;  %867 = vmatprep.subr.bf16.mxu1 %v1072_v0  ;;  %v225_v20 = vunpack.c.h.bf16 %v223_v5  ;;  %v679_v55 = vshrl.u32 %v678_v49, 7  ;;  %s698_s26 = sshll.u32 %s201_s4, 4  ;;  %s685_s8 = scalar_lea.sflag [#allocation5], %s1235_s24  ;;  %s1276_s26 = int_to_ptr.vmem [resolvable:$true] %s698_s26 }
  0x5c   : > { %v206_v10 = vmax.f32 %v204_v6, %v205_v8  ;;  %v213_v13 = vadd.f32 %v212_v9, %v211_v7  ;;  %v453_v23 = vunpack.c.l.bf16 %v452_v16  ;;  %v454_v24 = vunpack.c.h.bf16 %v452_v16  ;;  %s996_s2 = scalar_lea.vmem %s1276_s26, 64  ;;  %s1075_s9 = smov [#allocation8]  }
  0x5d   : > { %v226_v27 = vsub.f32 %v218_v2, %v224_v19  ;;  %v227_v28 = vsub.f32 %v219_v3, %v225_v20  ;;  %v680_v59 = vsub.s32 0, %v679_v55  ;;  %p997_p4 = scmp.ne.s32.totalorder %s1276_s26, %s996_s2  ;;  %s1000_s10 = sshll.u32 %s1075_s9, 4  ;;  %s1001_s10 = int_to_ptr.vmem [resolvable:$false] %s1000_s10 }
  0x5e   : > { %v207_v14 = vrot.slane %v206_v10, 2  ;;  %v214_v15 = vrot.slane %v213_v13, 2  ;;  %v455_v31 = vsub.f32 %v447_v11, %v453_v23  ;;  %v456_v32 = vsub.f32 %v448_v12, %v454_v24  ;;  %s1002_s11 = scalar_lea.vmem %s1001_s10, 128  ;;  %p1003_p10 = scmp.lt.s32.totalorder %s1276_s26, %s1001_s10 }
  0x5f   : > { %v865_v35 = vpack.c.bf16 %v227_v28, %v226_v27  ;;  %v676_v57 = vstv %s675_s19  ;;  %p998_p6 = pnand %p997_p4, %p1190_p12  ;;  %p1004_p13 = scmp.lt.s32.totalorder %s1002_s11, %s996_s2 }
  0x60   : > { %v208_v17 = vmax.f32 %v206_v10, %v207_v14  ;;  %v215_v18 = vadd.f32 %v214_v15, %v213_v13  ;;  %v874_v38 = vpack.c.bf16 %v456_v32, %v455_v31 }
  0x61   : > { %p999_p8 = pneg %p998_p6  ;;  %p1005_p3 = por %p1004_p13, %p1003_p10 }
  0x62   : > { %v209_v21 = vrot.slane %v208_v17, 1  ;;  %v216_v22 = vrot.slane %v215_v18, 1 }
  0x63   : > { %p1006_p7 = pnand %p1005_p3, %p999_p8 }
  0x64   : > { %v210_v25 = vmax.f32 %v208_v17, %v209_v21  ;;  %v217_v26 = vadd.f32 %v216_v22, %v215_v18 }
  0x66   : > { %v220_v29 = vpack.c.bf16 %v210_v25, %v210_v25  ;;  %v449_v30 = vpack.c.bf16 %v217_v26, %v217_v26 }
  0x68   : > { %v221_v33 = vunpack.c.l.bf16 %v220_v29  ;;  %v450_v34 = vunpack.c.l.bf16 %v449_v30 }
  0x6a   : > { %v222_v36 = vsub.f32 %v210_v25, %v221_v33  ;;  %828 = vmatmul.mubr.msk.f32.vlgmr.msra.gmra.mrb[0].mxu1 %vm228_vm2, %v221_v33  ;;  %v451_v37 = vsub.f32 %v217_v26, %v450_v34 }
  0x6b   : > { %869 = vmatpush3.bf16.msra.mxu1 %v452_v16  ;;  %841 = vmatprep.mubr.msk.f32.mxu1 %vm1073_vm0, %v1074_v1 }
  0x6c   : > { %821 = vmatmul.mubr.msk.f32.vlgmr.msra.gmra.mrb[0].mxu0 %vm228_vm2, %v222_v36  ;;  %873 = vmatprep.subr.bf16.mxu1 %v1072_v0 }
  0x6d   : > { %866 = vmatpush3.bf16.msra.mxu0 %v865_v35  ;;  %834 = vmatprep.mubr.msk.f32.mxu0 %vm1073_vm0, %v1074_v1 }
  0x6e   : > { %870 = vmatprep.subr.bf16.mxu0 %v1072_v0  ;;  %842 = vmatmul.mubr.msk.f32.vlgmr.msra.gmra.mrb[2].mxu1 %vm228_vm2, %v451_v37 }
  0x6f   : > { %875 = vmatpush3.bf16.msra.mxu1 %v874_v38  ;;  %855 = vmatprep.mubr.msk.f32.mxu1 %vm1073_vm0, %v1074_v1 }
  0x70   : > { %835 = vmatmul.mubr.msk.f32.vlgmr.msra.gmra.mrb[2].mxu0 %vm228_vm2, %v221_v33 }
  0x71   : > { %872 = vmatpush3.bf16.msra.mxu0 %v452_v16  ;;  %848 = vmatprep.mubr.msk.f32.mxu0 %vm1073_vm0, %v1074_v1 }
  0x72   : > { %856 = vmatmul.mubr.msk.f32.vlgmr.msra.gmra.mrb[4].mxu1 %vm228_vm2, %v450_v34 }
  0x74   : > { %849 = vmatmul.mubr.msk.f32.vlgmr.msra.gmra.mrb[4].mxu0 %vm228_vm2, %v450_v34 }
 0x13d   : > { %v371_v39 = vpop.f32.mrb[0].mxu1 }
 0x13e   : > { %v829_v40 = vpop.f32.mrb[1].mxu1 }
 0x13f   : > { %v298_v41 = vpop.f32.mrb[0].mxu0 }
 0x140   : > { %v372_v42 = vadd.f32 %v371_v39, %v298_v41  ;;  %v822_v43 = vpop.f32.mrb[1].mxu0 }
 0x141   : > { %v526_v44 = vpop.f32.mrb[2].mxu1 }
 0x142   : > { %v843_v45 = vpop.f32.mrb[3].mxu1 }
 0x143   : > { %v441_v46 = vpop.f32.mrb[2].mxu0 }
 0x144   : > { %v445_v47 = vadd.f32 %v441_v46, %v372_v42  ;;  %v836_v48 = vpop.f32.mrb[3].mxu0 }
 0x145   : > { %v669_v50 = vpop.f32.mrb[4].mxu1 }
 0x146   : > { %v857_v51 = vpop.f32.mrb[5].mxu1 }
 0x147   : > { %v599_v52 = vpop.f32.mrb[4].mxu0 }
 0x148   : > { %v600_v53 = vadd.f32 %v599_v52, %v526_v44  ;;  %v850_v54 = vpop.f32.mrb[5].mxu0 }
 0x14a   : > { %v673_v56 = vadd.f32 %v669_v50, %v600_v53 }
 0x14c   : > { %v674_v58 = vadd.f32 %v673_v56, %v445_v47 }
 0x14e   : > { %v677_v60 = vadd.f32 %v676_v57, %v674_v58 }
 0x150   : > { %v681_v61 = vrot.slane %v677_v60, %v680_v59 }
 0x152   : > { %v682_v62 = vmul.f32 %v681_v61, %v1251_v4 }
 0x154   : > { %683 = vst.msk [vmem:[%s201_s4] sm:$0xf] %vm203_vm1, %v682_v62 }
 0x155   : > { %1009 = shalt.err (!%p1006_p7)
}
 0x156   : > { %s1010_s12 = scalar_lea.hbm %s1274_s7, 64  ;;  %s1014_s29 = scalar_lea.hbm %s1322_s3, 128 }
 0x157   : > { %p1011_p9 = scmp.ne.s32.totalorder %s1274_s7, %s1010_s12  ;;  %p1015_p0 = scmp.lt.u32.totalorder %s1274_s7, %s1322_s3 }
 0x158   : > { %p1016_p11 = scmp.lt.u32.totalorder %s1014_s29, %s1010_s12  ;;  %p1018_p4 = scmp.lt.u32.totalorder %s1010_s12, %s1274_s7 }
 0x159   : > { %p1012_p2 = pnand %p1011_p9, %p1190_p12 }
 0x15a   : > { %p1017_p1 = por %p1016_p11, %p1015_p0 }
 0x15b   : > { %p1013_p5 = pneg %p1012_p2 }
 0x15c   : > { %p1019_p6 = por %p1018_p4, %p1017_p1 }
 0x15e   : > { %p1020_p8 = pnand %p1019_p6, %p1013_p5 }
 0x160   : > { %1023 = shalt.err (!%p1020_p8)
}
 0x161   : > { %882 = dma.vmem_to_hbm [thread:$0]  (%p1190_p12), %s1276_s26, 64, %s1274_s7, %s685_s8  }
 0x162 PF: > { %s710_s23 = sand.u32 1, %s1054_s14   ;;  %p1337_p10 = scmp.ne.s32.totalorder %s1327_s20, 0 }
 0x163   : > { %p1338_p13 = scmp.ge.s32.totalorder %s1066_s17, 2  ;;  %s711_s6 = scalar_lea.sflag [#allocation5], %s710_s23 }
 0x165   : > { %p893_p3 = pnand %p1338_p13, %p1337_p10 }
 0x167   : > { %1049 = dma.done.wait (!%p893_p3), %s711_s6, 64  }
 0x168   : > { %1051 = vsyncadd (!%p893_p3), %s711_s6, 4294967232  ;;  %p18_p7 = scmp.ge.s32.totalorder %s1155_s25, 4   ;;  %s1339_s14 = smov %s1058_s15 }
 0x169   : > { %s1340_s15 = smov %s1062_s16  ;;  %s1341_s16 = smov %s1186_s13 }
 0x16a   : > { %s1342_s17 = smov %s1155_s25  ;;  %20 = sbr.rel (!%p18_p7) target bundleno = 8 (0x8), region = 82 }
 0x171   :  { %716 = vsyncpa [#allocation4], 1 }
 0x172   :  { %718 = vsyncpa [#allocation4 + $0x1], 1 }
 0x173   :  { %719 = vsyncpa [#allocation7], 1 }
 0x174   :  { %720 = vsyncpa [#allocation5], 1 }
 0x175   :  { %722 = vsyncpa [#allocation5 + $0x1], 1 }

</bundles_post_ra>
